<compile_context>
chip_gen: v7x
topology: tpu7x:2x2x1
jax: 0.10.0
libtpu: 0.0.40
codegen_flags: <defaults>
</compile_context>

<pallas_src>
import math

import jax
import jax.numpy as jnp
from jax.experimental import pallas as pl
from jax.experimental.pallas import tpu as pltpu

# ---- model hyper-parameters (vector-env path of the module) ----------------
INPUT_DIM = 32             # input_shape = (32,)
HIDDEN = 128               # per-stream hidden width
FUSED_HIDDEN = 2 * HIDDEN  # value+advantage streams fused at layer 1
ACTION_DIM = 4
N_ATOMS = 51
ATOM_PAD = 128             # lane-aligned per-action atom segment
OUT_W = ACTION_DIM * ATOM_PAD           # kernel output width (512)
H3_W = (1 + ACTION_DIM) * ATOM_PAD      # fused layer-3 width (640)
STD_INIT = 0.5
NEG_PAD = -1e30            # pad-column bias; exp(pad - max) == 0 exactly
SPLIT_THRESHOLD = 256      # block_b at/above which zero-block fusion stops paying
MAX_BLOCK_B = 1024         # cap: fills MXU M, tiny VMEM footprint


# ----------------------------- Pallas kernels --------------------------------
def _dueling_softmax(values, adv, out_ref):
    """Dueling combine + per-action softmax on lane-aligned 128-wide segments.

    `values` is (Bb, 128), `adv` is a list of ACTION_DIM (Bb, 128) tiles.
    Pad lanes carry NEG_PAD and end up as exact zeros in the output.
    """
    adv_sum = adv[0]
    for a in range(1, ACTION_DIM):
        adv_sum = adv_sum + adv[a]
    adv_mean = adv_sum * (1.0 / ACTION_DIM)          # (Bb, 128); pads stay NEG_PAD
    vmm = values - adv_mean                          # pads: NEG_PAD - NEG_PAD == 0
    for a in range(ACTION_DIM):
        q = adv[a] + vmm                             # (Bb, 128); pads == NEG_PAD
        q = q - jnp.max(q, axis=-1, keepdims=True)
        e = jnp.exp(q)                               # pads -> 0 exactly
        # exact reciprocal: rows sum to 1 for the downstream distributional
        # projection (approx=True would be ~1e-3 off; cost negligible here).
        p = e * pl.reciprocal(jnp.sum(e, axis=-1, keepdims=True), approx=False)
        out_ref[:, a * ATOM_PAD:(a + 1) * ATOM_PAD] = p   # unmasked 128-lane vst


def rainbow_fused_kernel(x_ref, w1_ref, b1_ref, w2_ref, b2_ref, w3_ref, b3_ref,
                         out_ref):
    """Small-M (latency-bound) variant: 3 wide matmuls, block-diag layers 2/3."""
    x = x_ref[...].astype(jnp.bfloat16)                                  # (Bb, 32)

    h1 = jnp.dot(x, w1_ref[...], preferred_element_type=jnp.float32) + b1_ref[...]
    h1 = jnp.maximum(h1, 0.0).astype(jnp.bfloat16)                       # (Bb, 256)

    h2 = jnp.dot(h1, w2_ref[...], preferred_element_type=jnp.float32) + b2_ref[...]
    h2 = jnp.maximum(h2, 0.0).astype(jnp.bfloat16)                       # (Bb, 256)

    h3 = jnp.dot(h2, w3_ref[...], preferred_element_type=jnp.float32) + b3_ref[...]
    # h3: (Bb, 640) = [ value atoms (51 real + pads) | 4 x adv segments ]

    values = h3[:, 0:ATOM_PAD]
    adv = [h3[:, (a + 1) * ATOM_PAD:(a + 2) * ATOM_PAD] for a in range(ACTION_DIM)]
    _dueling_softmax(values, adv, out_ref)


def rainbow_split_kernel(x_ref, w1_ref, b1_ref,
                         wv2_ref, bv2_ref, wa2_ref, ba2_ref,
                         wv3_ref, bv3_ref, wa3_ref, ba3_ref,
                         out_ref):
    """Large-M (throughput-bound) variant: per-stream layers 2/3, no zero FLOPs."""
    x = x_ref[...].astype(jnp.bfloat16)                                  # (Bb, 32)

    h1 = jnp.dot(x, w1_ref[...], preferred_element_type=jnp.float32) + b1_ref[...]
    h1 = jnp.maximum(h1, 0.0).astype(jnp.bfloat16)                       # (Bb, 256)
    hv1 = h1[:, 0:HIDDEN]                        # lane-aligned 128-wide slices
    ha1 = h1[:, HIDDEN:FUSED_HIDDEN]

    hv2 = jnp.dot(hv1, wv2_ref[...], preferred_element_type=jnp.float32) + bv2_ref[...]
    hv2 = jnp.maximum(hv2, 0.0).astype(jnp.bfloat16)                     # (Bb, 128)
    ha2 = jnp.dot(ha1, wa2_ref[...], preferred_element_type=jnp.float32) + ba2_ref[...]
    ha2 = jnp.maximum(ha2, 0.0).astype(jnp.bfloat16)                     # (Bb, 128)

    values = jnp.dot(hv2, wv3_ref[...], preferred_element_type=jnp.float32) + bv3_ref[...]   # (Bb, 128)
    advf = jnp.dot(ha2, wa3_ref[...], preferred_element_type=jnp.float32) + ba3_ref[...]      # (Bb, 512)

    adv = [advf[:, a * ATOM_PAD:(a + 1) * ATOM_PAD] for a in range(ACTION_DIM)]
    _dueling_softmax(values, adv, out_ref)


# ------------------------- parameter construction ---------------------------
def _scale_noise(key, size):
    x = jax.random.normal(key, (size,), dtype=jnp.float32)
    return jnp.sign(x) * jnp.sqrt(jnp.abs(x))


def noisy_linear_effective(key, in_f, out_f, std_init=STD_INIT):
    """Effective (training-mode) weight/bias of a NoisyLinear layer.

    Returns W pre-transposed to (in, out) and bias as a (1, out) row so the
    kernel computes x @ W + b.
    """
    k1, k2, k3, k4 = jax.random.split(key, 4)
    mu_range = 1.0 / math.sqrt(in_f)
    w_mu = jax.random.uniform(k1, (out_f, in_f), jnp.float32, -mu_range, mu_range)
    w_sigma = jnp.full((out_f, in_f), std_init / math.sqrt(in_f), jnp.float32)
    b_mu = jax.random.uniform(k2, (out_f,), jnp.float32, -mu_range, mu_range)
    b_sigma = jnp.full((out_f,), std_init / math.sqrt(out_f), jnp.float32)
    eps_in = _scale_noise(k3, in_f)
    eps_out = _scale_noise(k4, out_f)
    w = w_mu + w_sigma * jnp.outer(eps_out, eps_in)
    b = b_mu + b_sigma * eps_out
    return w.T, b.reshape(1, out_f)


def _block_diag(a, b):
    za = jnp.zeros((a.shape[0], b.shape[1]), jnp.float32)
    zb = jnp.zeros((b.shape[0], a.shape[1]), jnp.float32)
    return jnp.concatenate([jnp.concatenate([a, za], axis=1),
                            jnp.concatenate([zb, b], axis=1)], axis=0)


def _pad_head(w, b, n_heads):
    """Pad each 51-wide head segment to 128 lanes (zero weight cols, NEG_PAD bias)."""
    wp = jnp.zeros((w.shape[0], n_heads * ATOM_PAD), jnp.float32)
    bp = jnp.full((1, n_heads * ATOM_PAD), NEG_PAD, jnp.float32)
    for h in range(n_heads):
        wp = wp.at[:, h * ATOM_PAD:h * ATOM_PAD + N_ATOMS].set(
            w[:, h * N_ATOMS:(h + 1) * N_ATOMS])
        bp = bp.at[:, h * ATOM_PAD:h * ATOM_PAD + N_ATOMS].set(
            b[:, h * N_ATOMS:(h + 1) * N_ATOMS])
    return wp, bp


def make_raw_params(key):
    keys = jax.random.split(key, 6)
    # value stream: in -> 128 -> 128 -> n_atoms
    wv1, bv1 = noisy_linear_effective(keys[0], INPUT_DIM, HIDDEN)
    wv2, bv2 = noisy_linear_effective(keys[1], HIDDEN, HIDDEN)
    wv3, bv3 = noisy_linear_effective(keys[2], HIDDEN, N_ATOMS)
    # advantage stream: in -> 128 -> 128 -> action_dim * n_atoms
    wa1, ba1 = noisy_linear_effective(keys[3], INPUT_DIM, HIDDEN)
    wa2, ba2 = noisy_linear_effective(keys[4], HIDDEN, HIDDEN)
    wa3, ba3 = noisy_linear_effective(keys[5], HIDDEN, ACTION_DIM * N_ATOMS)
    return (wv1, bv1, wv2, bv2, wv3, bv3, wa1, ba1, wa2, ba2, wa3, ba3)


def build_kernel_params(raw):
    """Build both the fused (small-M) and split (large-M) weight sets."""
    (wv1, bv1, wv2, bv2, wv3, bv3, wa1, ba1, wa2, ba2, wa3, ba3) = raw
    # layer 1: shared concat — no zero blocks, used by both variants
    w1 = jnp.concatenate([wv1, wa1], axis=1)                  # (32, 256)
    b1 = jnp.concatenate([bv1, ba1], axis=1)                  # (1, 256)
    # padded output heads (51 -> 128 lanes per head)
    wv3p, bv3p = _pad_head(wv3, bv3, 1)                       # (128,128),(1,128)
    wa3p, ba3p = _pad_head(wa3, ba3, ACTION_DIM)              # (128,512),(1,512)

    # fused variant: block-diagonal layers 2/3 (zero blocks hidden at small M)
    w2f = _block_diag(wv2, wa2)                               # (256, 256)
    b2f = jnp.concatenate([bv2, ba2], axis=1)                 # (1, 256)
    w3f = _block_diag(wv3p, wa3p)                             # (256, 640)
    b3f = jnp.concatenate([bv3p, ba3p], axis=1)               # (1, 640)
    fused = (w1.astype(jnp.bfloat16), b1,
             w2f.astype(jnp.bfloat16), b2f,
             w3f.astype(jnp.bfloat16), b3f)

    # split variant: per-stream layers 2/3 (no zero FLOPs; adv N=512 = 2x256 MXU)
    # TODO(synk): on v7x, fp8 weights for layers 2/3 (f32 accum) would give ~2x
    # MXU throughput at serving batch; kept bf16 so one weight set serves v5e/v6e too.
    split = (w1.astype(jnp.bfloat16), b1,
             wv2.astype(jnp.bfloat16), bv2,
             wa2.astype(jnp.bfloat16), ba2,
             wv3p.astype(jnp.bfloat16), bv3p,
             wa3p.astype(jnp.bfloat16), ba3p)
    return {"fused": fused, "split": split}


# ------------------------------ wrapper --------------------------------------
def _round_up(x, m):
    return ((x + m - 1) // m) * m


def _choose_block_b(batch):
    if batch <= 8:
        return batch                      # single step; latency-bound acting path
    # multiple of 8 sublanes, >= 2 grid steps (v7x dual-TC), capped at 1024 rows
    return min(MAX_BLOCK_B, _round_up(-(-batch // 2), 8))


def rainbow_forward(x, params, slice_atoms=True, block_b=None):
    """Rainbow forward pass.

    Returns softmax atom distributions.  With slice_atoms=True (default, module
    semantics) the result is (B, ACTION_DIM, N_ATOMS); with slice_atoms=False
    the padded lane-dense (B, ACTION_DIM, 128) slab is returned (pad atoms are
    exact zeros), avoiding an extra HBM round trip on the output — consumers
    should then index [:, :, :N_ATOMS] where needed.

    If this is called repeatedly at tiny batch (per-env-step acting), stack env
    copies / timesteps into the batch axis of ONE call: the weight DMA and call
    overhead then amortize across all rows.
    """
    batch = x.shape[0]
    if block_b is None:
        block_b = _choose_block_b(batch)
    padded_batch = _round_up(batch, block_b)
    if padded_batch != batch:
        x = jnp.pad(x, ((0, padded_batch - batch), (0, 0)))
    grid = (padded_batch // block_b,)

    if block_b >= SPLIT_THRESHOLD:
        kernel, weights = rainbow_split_kernel, params["split"]
    else:
        kernel, weights = rainbow_fused_kernel, params["fused"]

    in_specs = [pl.BlockSpec((block_b, INPUT_DIM), lambda i: (i, 0))]
    for p in weights:
        # whole-array weight/bias blocks, constant index across the batch grid
        # (DMA'd once, resident for every grid step)
        in_specs.append(pl.BlockSpec(p.shape, lambda i: (0, 0)))
    out_specs = pl.BlockSpec((block_b, OUT_W), lambda i: (i, 0))

    q_flat = pl.pallas_call(
        kernel,
        out_shape=jax.ShapeDtypeStruct((padded_batch, OUT_W), jnp.float32),
        grid_spec=pltpu.PrefetchScalarGridSpec(
            num_scalar_prefetch=0,
            grid=grid,
            in_specs=in_specs,
            out_specs=out_specs,
        ),
        compiler_params=pltpu.CompilerParams(
            dimension_semantics=("parallel",)),
    )(x, *weights)

    q = q_flat.reshape(padded_batch, ACTION_DIM, ATOM_PAD)   # free metadata reshape
    if padded_batch != batch:
        q = q[:batch]
    if slice_atoms:
        q = q[:, :, :N_ATOMS]
    return q


# pure-JAX f32 reference (mirrors the PyTorch forward) for sanity checking
def rainbow_reference(x, raw):
    (wv1, bv1, wv2, bv2, wv3, bv3, wa1, ba1, wa2, ba2, wa3, ba3) = raw
    hv = jnp.maximum(x @ wv1 + bv1, 0.0)
    hv = jnp.maximum(hv @ wv2 + bv2, 0.0)
    values = (hv @ wv3 + bv3).reshape(x.shape[0], 1, N_ATOMS)
    ha = jnp.maximum(x @ wa1 + ba1, 0.0)
    ha = jnp.maximum(ha @ wa2 + ba2, 0.0)
    adv = (ha @ wa3 + ba3).reshape(x.shape[0], ACTION_DIM, N_ATOMS)
    q_atoms = values + adv - adv.mean(axis=1, keepdims=True)
    return jax.nn.softmax(q_atoms, axis=2)


if __name__ == "__main__":
    key = jax.random.PRNGKey(0)
    kx_small, kp, kx_big = jax.random.split(key, 3)
    raw_params = make_raw_params(kp)
    params = build_kernel_params(raw_params)

    # --- small (acting) batch: fused kernel, single grid step ---------------
    x_small = jax.random.normal(kx_small, (8, INPUT_DIM), dtype=jnp.float32)
    q_small = jax.block_until_ready(rainbow_forward(x_small, params))
    ref_small = rainbow_reference(x_small, raw_params)
    assert q_small.shape == (8, ACTION_DIM, N_ATOMS)
    assert bool(jnp.all(jnp.isfinite(q_small)))
    assert bool(jnp.allclose(jnp.sum(q_small, axis=-1), 1.0, atol=1e-3))
    assert bool(jnp.allclose(q_small, ref_small, atol=1e-2, rtol=1e-2))

    # --- serving-scale batch: split kernel, 2 grid steps (both v7x TCs) -----
    x_big = jax.random.normal(kx_big, (512, INPUT_DIM), dtype=jnp.float32)
    q_big_pad = jax.block_until_ready(
        rainbow_forward(x_big, params, slice_atoms=False))
    assert q_big_pad.shape == (512, ACTION_DIM, ATOM_PAD)
    assert bool(jnp.all(jnp.isfinite(q_big_pad)))
    assert bool(jnp.allclose(q_big_pad[:, :, N_ATOMS:], 0.0))  # pads exact zeros
    ref_big = rainbow_reference(x_big, raw_params)
    assert bool(jnp.allclose(q_big_pad[:, :, :N_ATOMS], ref_big,
                             atol=1e-2, rtol=1e-2))
    assert bool(jnp.allclose(jnp.sum(q_big_pad, axis=-1), 1.0, atol=1e-3))

    print("KERNEL_OK")
</pallas_src>

<mosaic_0001>
module attributes {stable_mosaic.version = 11 : i64} {
  func.func @rainbow_fused_kernel(%arg0: i32, %arg1: memref<8x32xf32, #tpu.memory_space<vmem>>, %arg2: memref<32x256xbf16, #tpu.memory_space<vmem>>, %arg3: memref<1x256xf32, #tpu.memory_space<vmem>>, %arg4: memref<256x256xbf16, #tpu.memory_space<vmem>>, %arg5: memref<1x256xf32, #tpu.memory_space<vmem>>, %arg6: memref<256x640xbf16, #tpu.memory_space<vmem>>, %arg7: memref<1x640xf32, #tpu.memory_space<vmem>>, %arg8: memref<8x512xf32, #tpu.memory_space<vmem>>) attributes {dimension_semantics = [#tpu.dimension_semantics<parallel>], iteration_bounds = array<i64: 1>, scalar_prefetch = 0 : i64, scratch_operands = 0 : i64, tpu.core_type = #tpu.core_type<tc>, window_params = [{transform_indices = @transform_0, window_bounds = array<i64: 8, 32>}, {pipeline_mode = #tpu.pipeline_mode<synchronous>, transform_indices = @transform_1, window_bounds = array<i64: 32, 256>}, {pipeline_mode = #tpu.pipeline_mode<synchronous>, transform_indices = @transform_2, window_bounds = array<i64: 1, 256>}, {pipeline_mode = #tpu.pipeline_mode<synchronous>, transform_indices = @transform_3, window_bounds = array<i64: 256, 256>}, {pipeline_mode = #tpu.pipeline_mode<synchronous>, transform_indices = @transform_4, window_bounds = array<i64: 1, 256>}, {pipeline_mode = #tpu.pipeline_mode<synchronous>, transform_indices = @transform_5, window_bounds = array<i64: 256, 640>}, {pipeline_mode = #tpu.pipeline_mode<synchronous>, transform_indices = @transform_6, window_bounds = array<i64: 1, 640>}, {transform_indices = @transform_7, window_bounds = array<i64: 8, 512>}]} {
    %c0 = arith.constant 0 : index
    %c0_0 = arith.constant 0 : index
    %0 = vector.load %arg1[%c0, %c0_0] : memref<8x32xf32, #tpu.memory_space<vmem>>, vector<8x32xf32>
    %1 = arith.truncf %0 : vector<8x32xf32> to vector<8x32xbf16>
    %c0_1 = arith.constant 0 : index
    %c0_2 = arith.constant 0 : index
    %2 = vector.load %arg2[%c0_1, %c0_2] : memref<32x256xbf16, #tpu.memory_space<vmem>>, vector<32x256xbf16>
    %cst = arith.constant dense<0.000000e+00> : vector<8x256xf32>
    %3 = tpu.matmul %1, %2, %cst {dimension_numbers = #tpu.dot_dimension_numbers<[1], [0], [0], [1], [0, 0, 1, 1], [], []>} : vector<8x32xbf16>, vector<32x256xbf16>, vector<8x256xf32> -> vector<8x256xf32>
    %c0_3 = arith.constant 0 : index
    %c0_4 = arith.constant 0 : index
    %4 = vector.load %arg3[%c0_3, %c0_4] : memref<1x256xf32, #tpu.memory_space<vmem>>, vector<1x256xf32>
    %5 = vector.broadcast %4 : vector<1x256xf32> to vector<8x256xf32>
    %6 = arith.addf %3, %5 : vector<8x256xf32>
    %cst_5 = arith.constant 0.000000e+00 : f32
    %7 = vector.broadcast %cst_5 : f32 to vector<8x256xf32>
    %8 = arith.maximumf %6, %7 : vector<8x256xf32>
    %9 = arith.truncf %8 : vector<8x256xf32> to vector<8x256xbf16>
    %c0_6 = arith.constant 0 : index
    %c0_7 = arith.constant 0 : index
    %10 = vector.load %arg4[%c0_6, %c0_7] : memref<256x256xbf16, #tpu.memory_space<vmem>>, vector<256x256xbf16>
    %cst_8 = arith.constant dense<0.000000e+00> : vector<8x256xf32>
    %11 = tpu.matmul %9, %10, %cst_8 {dimension_numbers = #tpu.dot_dimension_numbers<[1], [0], [0], [1], [0, 0, 1, 1], [], []>} : vector<8x256xbf16>, vector<256x256xbf16>, vector<8x256xf32> -> vector<8x256xf32>
    %c0_9 = arith.constant 0 : index
    %c0_10 = arith.constant 0 : index
    %12 = vector.load %arg5[%c0_9, %c0_10] : memref<1x256xf32, #tpu.memory_space<vmem>>, vector<1x256xf32>
    %13 = vector.broadcast %12 : vector<1x256xf32> to vector<8x256xf32>
    %14 = arith.addf %11, %13 : vector<8x256xf32>
    %cst_11 = arith.constant 0.000000e+00 : f32
    %15 = vector.broadcast %cst_11 : f32 to vector<8x256xf32>
    %16 = arith.maximumf %14, %15 : vector<8x256xf32>
    %17 = arith.truncf %16 : vector<8x256xf32> to vector<8x256xbf16>
    %c0_12 = arith.constant 0 : index
    %c0_13 = arith.constant 0 : index
    %18 = vector.load %arg6[%c0_12, %c0_13] : memref<256x640xbf16, #tpu.memory_space<vmem>>, vector<256x640xbf16>
    %cst_14 = arith.constant dense<0.000000e+00> : vector<8x640xf32>
    %19 = tpu.matmul %17, %18, %cst_14 {dimension_numbers = #tpu.dot_dimension_numbers<[1], [0], [0], [1], [0, 0, 1, 1], [], []>} : vector<8x256xbf16>, vector<256x640xbf16>, vector<8x640xf32> -> vector<8x640xf32>
    %c0_15 = arith.constant 0 : index
    %c0_16 = arith.constant 0 : index
    %20 = vector.load %arg7[%c0_15, %c0_16] : memref<1x640xf32, #tpu.memory_space<vmem>>, vector<1x640xf32>
    %21 = vector.broadcast %20 : vector<1x640xf32> to vector<8x640xf32>
    %22 = arith.addf %19, %21 : vector<8x640xf32>
    %23 = vector.extract_strided_slice %22 {offsets = [0, 0], sizes = [8, 128], strides = [1, 1]} : vector<8x640xf32> to vector<8x128xf32>
    %24 = vector.extract_strided_slice %22 {offsets = [0, 128], sizes = [8, 128], strides = [1, 1]} : vector<8x640xf32> to vector<8x128xf32>
    %25 = vector.extract_strided_slice %22 {offsets = [0, 256], sizes = [8, 128], strides = [1, 1]} : vector<8x640xf32> to vector<8x128xf32>
    %26 = vector.extract_strided_slice %22 {offsets = [0, 384], sizes = [8, 128], strides = [1, 1]} : vector<8x640xf32> to vector<8x128xf32>
    %27 = vector.extract_strided_slice %22 {offsets = [0, 512], sizes = [8, 128], strides = [1, 1]} : vector<8x640xf32> to vector<8x128xf32>
    %28 = arith.addf %24, %25 : vector<8x128xf32>
    %29 = arith.addf %28, %26 : vector<8x128xf32>
    %30 = arith.addf %29, %27 : vector<8x128xf32>
    %cst_17 = arith.constant 2.500000e-01 : f32
    %31 = vector.broadcast %cst_17 : f32 to vector<8x128xf32>
    %32 = arith.mulf %30, %31 : vector<8x128xf32>
    %33 = arith.subf %23, %32 : vector<8x128xf32>
    %34 = arith.addf %24, %33 : vector<8x128xf32>
    %cst_18 = arith.constant dense<0xFF800000> : vector<8xf32>
    %35 = vector.multi_reduction <maximumf>, %34, %cst_18 [1] : vector<8x128xf32> to vector<8xf32>
    %36 = vector.shape_cast %35 : vector<8xf32> to vector<8x1xf32>
    %37 = vector.broadcast %36 : vector<8x1xf32> to vector<8x128xf32>
    %38 = arith.subf %34, %37 : vector<8x128xf32>
    %39 = math.exp %38 : vector<8x128xf32>
    %cst_19 = arith.constant dense<0.000000e+00> : vector<8xf32>
    %40 = vector.multi_reduction <add>, %39, %cst_19 [1] : vector<8x128xf32> to vector<8xf32>
    %41 = vector.shape_cast %40 : vector<8xf32> to vector<8x1xf32>
    %42 = tpu.reciprocal %41 : vector<8x1xf32> -> vector<8x1xf32>
    %43 = vector.broadcast %42 : vector<8x1xf32> to vector<8x128xf32>
    %44 = arith.mulf %39, %43 : vector<8x128xf32>
    %c0_20 = arith.constant 0 : index
    %c0_21 = arith.constant 0 : index
    %45 = vector.load %arg8[%c0_20, %c0_21] : memref<8x512xf32, #tpu.memory_space<vmem>>, vector<8x128xf32>
    tpu.vector_store %arg8[%c0_20, %c0_21], %44 {strides = array<i32>} : memref<8x512xf32, #tpu.memory_space<vmem>>, vector<8x128xf32>,
    %46 = arith.addf %25, %33 : vector<8x128xf32>
    %cst_22 = arith.constant dense<0xFF800000> : vector<8xf32>
    %47 = vector.multi_reduction <maximumf>, %46, %cst_22 [1] : vector<8x128xf32> to vector<8xf32>
    %48 = vector.shape_cast %47 : vector<8xf32> to vector<8x1xf32>
    %49 = vector.broadcast %48 : vector<8x1xf32> to vector<8x128xf32>
    %50 = arith.subf %46, %49 : vector<8x128xf32>
    %51 = math.exp %50 : vector<8x128xf32>
    %cst_23 = arith.constant dense<0.000000e+00> : vector<8xf32>
    %52 = vector.multi_reduction <add>, %51, %cst_23 [1] : vector<8x128xf32> to vector<8xf32>
    %53 = vector.shape_cast %52 : vector<8xf32> to vector<8x1xf32>
    %54 = tpu.reciprocal %53 : vector<8x1xf32> -> vector<8x1xf32>
    %55 = vector.broadcast %54 : vector<8x1xf32> to vector<8x128xf32>
    %56 = arith.mulf %51, %55 : vector<8x128xf32>
    %c0_24 = arith.constant 0 : index
    %c128 = arith.constant 128 : index
    %57 = vector.load %arg8[%c0_24, %c128] : memref<8x512xf32, #tpu.memory_space<vmem>>, vector<8x128xf32>
    tpu.vector_store %arg8[%c0_24, %c128], %56 {strides = array<i32>} : memref<8x512xf32, #tpu.memory_space<vmem>>, vector<8x128xf32>,
    %58 = arith.addf %26, %33 : vector<8x128xf32>
    %cst_25 = arith.constant dense<0xFF800000> : vector<8xf32>
    %59 = vector.multi_reduction <maximumf>, %58, %cst_25 [1] : vector<8x128xf32> to vector<8xf32>
    %60 = vector.shape_cast %59 : vector<8xf32> to vector<8x1xf32>
    %61 = vector.broadcast %60 : vector<8x1xf32> to vector<8x128xf32>
    %62 = arith.subf %58, %61 : vector<8x128xf32>
    %63 = math.exp %62 : vector<8x128xf32>
    %cst_26 = arith.constant dense<0.000000e+00> : vector<8xf32>
    %64 = vector.multi_reduction <add>, %63, %cst_26 [1] : vector<8x128xf32> to vector<8xf32>
    %65 = vector.shape_cast %64 : vector<8xf32> to vector<8x1xf32>
    %66 = tpu.reciprocal %65 : vector<8x1xf32> -> vector<8x1xf32>
    %67 = vector.broadcast %66 : vector<8x1xf32> to vector<8x128xf32>
    %68 = arith.mulf %63, %67 : vector<8x128xf32>
    %c0_27 = arith.constant 0 : index
    %c256 = arith.constant 256 : index
    %69 = vector.load %arg8[%c0_27, %c256] : memref<8x512xf32, #tpu.memory_space<vmem>>, vector<8x128xf32>
    tpu.vector_store %arg8[%c0_27, %c256], %68 {strides = array<i32>} : memref<8x512xf32, #tpu.memory_space<vmem>>, vector<8x128xf32>,
    %70 = arith.addf %27, %33 : vector<8x128xf32>
    %cst_28 = arith.constant dense<0xFF800000> : vector<8xf32>
    %71 = vector.multi_reduction <maximumf>, %70, %cst_28 [1] : vector<8x128xf32> to vector<8xf32>
    %72 = vector.shape_cast %71 : vector<8xf32> to vector<8x1xf32>
    %73 = vector.broadcast %72 : vector<8x1xf32> to vector<8x128xf32>
    %74 = arith.subf %70, %73 : vector<8x128xf32>
    %75 = math.exp %74 : vector<8x128xf32>
    %cst_29 = arith.constant dense<0.000000e+00> : vector<8xf32>
    %76 = vector.multi_reduction <add>, %75, %cst_29 [1] : vector<8x128xf32> to vector<8xf32>
    %77 = vector.shape_cast %76 : vector<8xf32> to vector<8x1xf32>
    %78 = tpu.reciprocal %77 : vector<8x1xf32> -> vector<8x1xf32>
    %79 = vector.broadcast %78 : vector<8x1xf32> to vector<8x128xf32>
    %80 = arith.mulf %75, %79 : vector<8x128xf32>
    %c0_30 = arith.constant 0 : index
    %c384 = arith.constant 384 : index
    %81 = vector.load %arg8[%c0_30, %c384] : memref<8x512xf32, #tpu.memory_space<vmem>>, vector<8x128xf32>
    tpu.vector_store %arg8[%c0_30, %c384], %80 {strides = array<i32>} : memref<8x512xf32, #tpu.memory_space<vmem>>, vector<8x128xf32>,
    return
  }
  func.func @transform_0(%arg0: i32) -> (i32, i32) {
    %c0_i32 = arith.constant 0 : i32
    %c0_i32_0 = arith.constant 0 : i32
    return %arg0, %c0_i32 : i32, i32
  }
  func.func @transform_1(%arg0: i32) -> (i32, i32) {
    %c0_i32 = arith.constant 0 : i32
    %c0_i32_0 = arith.constant 0 : i32
    %c0_i32_1 = arith.constant 0 : i32
    return %c0_i32, %c0_i32_0 : i32, i32
  }
  func.func @transform_2(%arg0: i32) -> (i32, i32) {
    %c0_i32 = arith.constant 0 : i32
    %c0_i32_0 = arith.constant 0 : i32
    %c0_i32_1 = arith.constant 0 : i32
    return %c0_i32, %c0_i32_0 : i32, i32
  }
  func.func @transform_3(%arg0: i32) -> (i32, i32) {
    %c0_i32 = arith.constant 0 : i32
    %c0_i32_0 = arith.constant 0 : i32
    %c0_i32_1 = arith.constant 0 : i32
    return %c0_i32, %c0_i32_0 : i32, i32
  }
  func.func @transform_4(%arg0: i32) -> (i32, i32) {
    %c0_i32 = arith.constant 0 : i32
    %c0_i32_0 = arith.constant 0 : i32
    %c0_i32_1 = arith.constant 0 : i32
    return %c0_i32, %c0_i32_0 : i32, i32
  }
  func.func @transform_5(%arg0: i32) -> (i32, i32) {
    %c0_i32 = arith.constant 0 : i32
    %c0_i32_0 = arith.constant 0 : i32
    %c0_i32_1 = arith.constant 0 : i32
    return %c0_i32, %c0_i32_0 : i32, i32
  }
  func.func @transform_6(%arg0: i32) -> (i32, i32) {
    %c0_i32 = arith.constant 0 : i32
    %c0_i32_0 = arith.constant 0 : i32
    %c0_i32_1 = arith.constant 0 : i32
    return %c0_i32, %c0_i32_0 : i32, i32
  }
  func.func @transform_7(%arg0: i32) -> (i32, i32) {
    %c0_i32 = arith.constant 0 : i32
    %c0_i32_0 = arith.constant 0 : i32
    return %arg0, %c0_i32 : i32, i32
  }
}

</mosaic_0001>

<bundles_post_ra>
// kernel: tpu_custom_call.1
= control target key start
LH: loop header
LB: loop body
LE: loop exit
PB: predicated region body
PF: predicated region fallthrough
CT: control target
= control target key end

     0   :  { %12 = vsyncpa [#allocation3], 0  ;;  %s1735_s0 = inlined_call_operand.hbm [shape: f32[8,32], index: 0, kind: input, shape index: {}]   ;;  %s1736_s1 = inlined_call_operand.hbm [shape: bf16[32,256], index: 1, kind: input, shape index: {}]   ;;  %s1737_s2 = inlined_call_operand.vmem [shape: f32[1,256], index: 2, kind: input, shape index: {}]   ;;  %s1738_s3 = inlined_call_operand.hbm [shape: bf16[256,256], index: 3, kind: input, shape index: {}]   ;;  %s1739_s4 = inlined_call_operand.vmem [shape: f32[1,256], index: 4, kind: input, shape index: {}]   ;;  %s1740_s5 = inlined_call_operand.hbm [shape: bf16[256,640], index: 5, kind: input, shape index: {}]   ;;  %s1741_s6 = inlined_call_operand.vmem [shape: f32[1,640], index: 6, kind: input, shape index: {}]   ;;  %s1742_s7 = inlined_call_operand.hbm [shape: f32[8,512], index: 7, kind: output, shape index: {}]  }
   0x1   :  { %13 = vsyncpa [#allocation6], 0 }
   0x2   :  { %14 = vsyncpa [#allocation9], 0 }
   0x3   :  { %15 = vsyncpa [#allocation4], 0  ;;  %s1593_s24 = smov [#allocation5]   ;;  %s1475_s28 = scalar_lea.hbm %s1736_s1, 512 }
   0x4   :  { %s31_s25 = sshll.u32 %s1593_s24, 4  ;;  %p1476_p0 = scmp.ne.s32.totalorder %s1736_s1, %s1475_s28  ;;  %s32_s25 = int_to_ptr.vmem [resolvable:$true] %s31_s25 }
   0x5   :  { %p1479_p1 = scmp.lt.u32.totalorder %s1475_s28, %s1736_s1 }
   0x7   :  { %p1481_p2 = pnand %p1479_p1, %p1476_p0 }
   0x9   :  { %1484 = shalt.err (!%p1481_p2)
}
   0xa   :  { %s1485_s10 = scalar_lea.vmem %s32_s25, 512  ;;  %p1490_p4 = scmp.lt.s32.totalorder %s32_s25, %s32_s25 }
   0xb   :  { %p1486_p3 = scmp.ne.s32.totalorder %s32_s25, %s1485_s10  ;;  %p1491_p5 = scmp.lt.s32.totalorder %s1485_s10, %s1485_s10 }
   0xd   :  { %p1492_p6 = por %p1491_p5, %p1490_p4 }
   0xf   :  { %p1493_p7 = pnand %p1492_p6, %p1486_p3 }
  0x11   :  { %1496 = shalt.err (!%p1493_p7)
}
  0x12   :  { %s1594_s11 = smov 128   ;;  %s1595_s12 = smov 8  }
  0x13   :  { %37 = dma.hbm_to_vmem [thread:$0]  %s1736_s1, 512, %s32_s25, [#allocation6], %s1594_s11, %s1594_s11, %s1595_s12  }
  0x14   :  { %s1596_s15 = smov [#allocation2]   ;;  %s1597_s17 = smov [#allocation7]  }
  0x15   :  { %s22_s16 = sshll.u32 %s1596_s15, 4  ;;  %s45_s18 = sshll.u32 %s1597_s17, 4  ;;  %s23_s16 = int_to_ptr.vmem [resolvable:$true] %s22_s16  ;;  %s46_s18 = int_to_ptr.vmem [resolvable:$true] %s45_s18 }
  0x16   :  { %s1497_s21 = scalar_lea.hbm %s1735_s0, 128 }
  0x17   :  { %p1498_p8 = scmp.ne.s32.totalorder %s1735_s0, %s1497_s21  ;;  %p1501_p9 = scmp.lt.u32.totalorder %s1497_s21, %s1735_s0 }
  0x19   :  { %p1503_p10 = pnand %p1501_p9, %p1498_p8 }
  0x1b   :  { %1506 = shalt.err (!%p1503_p10)
}
  0x1c   :  { %s1507_s1 = scalar_lea.vmem %s23_s16, 128  ;;  %p1512_p12 = scmp.lt.s32.totalorder %s23_s16, %s23_s16 }
  0x1d   :  { %p1508_p11 = scmp.ne.s32.totalorder %s23_s16, %s1507_s1  ;;  %p1513_p13 = scmp.lt.s32.totalorder %s1507_s1, %s1507_s1 }
  0x1f   :  { %p1514_p0 = por %p1513_p13, %p1512_p12 }
  0x21   :  { %p1515_p1 = pnand %p1514_p0, %p1508_p11 }
  0x23   :  { %1518 = shalt.err (!%p1515_p1)
}
  0x24   :  { %25 = dma.hbm_to_vmem [thread:$0]  %s1735_s0, 128, %s23_s16, [#allocation3]  }
  0x25   :  { %s1519_s30 = scalar_lea.hbm %s1738_s3, 4096 }
  0x26   :  { %p1520_p2 = scmp.ne.s32.totalorder %s1738_s3, %s1519_s30  ;;  %p1523_p3 = scmp.lt.u32.totalorder %s1519_s30, %s1738_s3 }
  0x28   :  { %p1525_p4 = pnand %p1523_p3, %p1520_p2 }
  0x2a   :  { %1528 = shalt.err (!%p1525_p4)
}
  0x2b   :  { %s1529_s14 = scalar_lea.vmem %s46_s18, 4096  ;;  %p1534_p6 = scmp.lt.s32.totalorder %s46_s18, %s46_s18 }
  0x2c   :  { %p1530_p5 = scmp.ne.s32.totalorder %s46_s18, %s1529_s14  ;;  %p1535_p7 = scmp.lt.s32.totalorder %s1529_s14, %s1529_s14 }
  0x2e   :  { %p1536_p8 = por %p1535_p7, %p1534_p6 }
  0x30   :  { %p1537_p9 = pnand %p1536_p8, %p1530_p5 }
  0x32   :  { %1540 = shalt.err (!%p1537_p9)
}
  0x33   :  { %51 = dma.hbm_to_vmem [thread:$0]  %s1738_s3, 4096, %s46_s18, [#allocation6], %s1594_s11, %s1594_s11, %s1595_s12  }
  0x34   :  { %s1598_s16 = smov [#allocation8]   ;;  %s1541_s21 = scalar_lea.hbm %s1740_s5, 10240 }
  0x35   :  { %s59_s17 = sshll.u32 %s1598_s16, 4  ;;  %p1542_p10 = scmp.ne.s32.totalorder %s1740_s5, %s1541_s21  ;;  %s60_s17 = int_to_ptr.vmem [resolvable:$true] %s59_s17 }
  0x36   :  { %p1545_p11 = scmp.lt.u32.totalorder %s1541_s21, %s1740_s5 }
  0x38   :  { %p1547_p12 = pnand %p1545_p11, %p1542_p10 }
  0x3a   :  { %1550 = shalt.err (!%p1547_p12)
}
  0x3b   :  { %s1551_s1 = scalar_lea.vmem %s60_s17, 10240  ;;  %p1556_p0 = scmp.lt.s32.totalorder %s60_s17, %s60_s17 }
  0x3c   :  { %p1552_p13 = scmp.ne.s32.totalorder %s60_s17, %s1551_s1  ;;  %p1557_p1 = scmp.lt.s32.totalorder %s1551_s1, %s1551_s1 }
  0x3e   :  { %p1558_p2 = por %p1557_p1, %p1556_p0 }
  0x40   :  { %p1559_p3 = pnand %p1558_p2, %p1552_p13 }
  0x42   :  { %1562 = shalt.err (!%p1559_p3)
}
  0x43   :  { %s1599_s3 = smov 320   ;;  %s1600_s11 = smov 20  }
  0x44   :  { %65 = dma.hbm_to_vmem [thread:$0]  %s1740_s5, 10240, %s60_s17, [#allocation9], %s1599_s3, %s1599_s3, %s1600_s11  }
  0x45   :  { %1585 = dma.done.wait [#allocation3], 128  }
  0x46   :  { %1586 = vsyncadd [#allocation3], 4294967168 }
  0x47   :  { %1587 = dma.done.wait [#allocation6], 4608  }
  0x48   :  { %1588 = vsyncadd [#allocation6], 4294962688 }
  0x49   :  { %1589 = dma.done.wait [#allocation9], 10240  }
  0x4a   :  { %1590 = vsyncadd [#allocation9], 4294957056  ;;  %v1601_v0 = vmov 0   ;;  %v1293_v1 = vld [vmem:[#allocation5 + $0x4] ss:$8 sps:$4 sm:$0xff]   ;;  %v81_v5 = vld [vmem:[#allocation2] sm:$0xff] }
  0x4b   :  { %155 = vmatprep.mubr.bf16.mxu0 %v1601_v0  ;;  %v1295_v2 = vld [vmem:[#allocation5] ss:$8 sps:$4 sm:$0xff]   ;;  %123 = vmatprep.subr.bf16.mxu0 %v1293_v1  ;;  %v1296_v3 = vld [vmem:[#allocation5 + $0x14] ss:$8 sps:$4 sm:$0xff]   ;;  %v1298_v4 = vld [vmem:[#allocation5 + $0x10] ss:$8 sps:$4 sm:$0xff]   ;;  %v82_v9 = vpack.c.bf16 %v81_v5, %v81_v5 }
  0x4c   :  { %124 = vmatpush1.bf16.msra.mxu0 %v1295_v2  ;;  %v1299_v6 = vld [vmem:[#allocation7 + $0x4] ss:$8 sps:$4 sm:$0xff]   ;;  %v1301_v7 = vld [vmem:[#allocation7] ss:$8 sps:$4 sm:$0xff]   ;;  %v1302_v8 = vld [vmem:[#allocation7 + $0x14] ss:$8 sps:$4 sm:$0xff]  }
  0x4d   :  { %125 = vmatprep.subr.bf16.mxu0 %v1296_v3  ;;  %372 = vmatprep.subr.bf16.mxu1 %v1299_v6  ;;  %v1304_v10 = vld [vmem:[#allocation7 + $0x10] ss:$8 sps:$4 sm:$0xff]   ;;  %vm119_vm0 = vcmask 261120   ;;  %v1305_v11 = vld [vmem:[#allocation7 + $0x24] ss:$8 sps:$4 sm:$0xff]  }
  0x4e   :  { %373 = vmatpush1.bf16.msra.mxu1 %v1301_v7  ;;  %v1307_v12 = vld [vmem:[#allocation7 + $0x20] ss:$8 sps:$4 sm:$0xff]   ;;  %v1308_v13 = vld [vmem:[#allocation7 + $0x34] ss:$8 sps:$4 sm:$0xff]   ;;  %v1310_v14 = vld [vmem:[#allocation7 + $0x30] ss:$8 sps:$4 sm:$0xff]  }
  0x4f   :  { %374 = vmatprep.subr.bf16.mxu1 %v1302_v8  ;;  %v1311_v15 = vld [vmem:[#allocation7 + $0x44] ss:$8 sps:$4 sm:$0xff]   ;;  %v1313_v16 = vld [vmem:[#allocation7 + $0x40] ss:$8 sps:$4 sm:$0xff]   ;;  %v1314_v17 = vld [vmem:[#allocation7 + $0x54] ss:$8 sps:$4 sm:$0xff]  }
  0x50   :  { %126 = vmatpush1.bf16.msra.mxu0 %v1298_v4  ;;  %v1316_v18 = vld [vmem:[#allocation7 + $0x50] ss:$8 sps:$4 sm:$0xff]   ;;  %v1317_v19 = vld [vmem:[#allocation7 + $0x64] ss:$8 sps:$4 sm:$0xff]   ;;  %v1319_v20 = vld [vmem:[#allocation7 + $0x60] ss:$8 sps:$4 sm:$0xff]   ;;  %v89_v4 = vlaneseq }
  0x51   :  { %v1320_v21 = vld [vmem:[#allocation7 + $0x74] ss:$8 sps:$4 sm:$0xff]   ;;  %v1322_v22 = vld [vmem:[#allocation7 + $0x70] ss:$8 sps:$4 sm:$0xff]   ;;  %v1323_v23 = vld [vmem:[#allocation7 + $0x84] ss:$8 sps:$4 sm:$0xff]  }
  0x52   :  { %375 = vmatpush1.bf16.msra.mxu1 %v1304_v10  ;;  %v1325_v24 = vld [vmem:[#allocation7 + $0x80] ss:$8 sps:$4 sm:$0xff]   ;;  %v1326_v25 = vld [vmem:[#allocation7 + $0x94] ss:$8 sps:$4 sm:$0xff]   ;;  %v1328_v26 = vld [vmem:[#allocation7 + $0x90] ss:$8 sps:$4 sm:$0xff]  }
  0x53   :  { %1148 = vmatmul.mubr.msk.bf16.vlgmr.msra.gmra.mrb[0].mxu0 %vm119_vm0, %v82_v9  ;;  %376 = vmatprep.subr.bf16.mxu1 %v1305_v11  ;;  %v1329_v27 = vld [vmem:[#allocation7 + $0xa4] ss:$8 sps:$4 sm:$0xff]   ;;  %v1331_v28 = vld [vmem:[#allocation7 + $0xa0] ss:$8 sps:$4 sm:$0xff]   ;;  %v1332_v29 = vld [vmem:[#allocation7 + $0xb4] ss:$8 sps:$4 sm:$0xff]  }
  0x54   :  { %v1334_v30 = vld [vmem:[#allocation7 + $0xb0] ss:$8 sps:$4 sm:$0xff]   ;;  %v1335_v31 = vld [vmem:[#allocation7 + $0xc4] ss:$8 sps:$4 sm:$0xff]   ;;  %v1337_v32 = vld [vmem:[#allocation7 + $0xc0] ss:$8 sps:$4 sm:$0xff]  }
  0x55   :  { %v1338_v33 = vld [vmem:[#allocation7 + $0xd4] ss:$8 sps:$4 sm:$0xff]   ;;  %v1340_v34 = vld [vmem:[#allocation7 + $0xd0] ss:$8 sps:$4 sm:$0xff]   ;;  %v1341_v35 = vld [vmem:[#allocation7 + $0xe4] ss:$8 sps:$4 sm:$0xff]  }
  0x56   :  { %377 = vmatpush1.bf16.msra.mxu1 %v1307_v12  ;;  %v1343_v36 = vld [vmem:[#allocation7 + $0xe0] ss:$8 sps:$4 sm:$0xff]   ;;  %v1344_v37 = vld [vmem:[#allocation7 + $0xf4] ss:$8 sps:$4 sm:$0xff]   ;;  %v1346_v38 = vld [vmem:[#allocation7 + $0xf0] ss:$8 sps:$4 sm:$0xff]  }
  0x57   :  { %378 = vmatprep.subr.bf16.mxu1 %v1308_v13  ;;  %v1347_v39 = vld [vmem:[#allocation8] ss:$20 sps:$4 sm:$0xff]   ;;  %v1349_v40 = vld [vmem:[#allocation8 + $0x4] ss:$20 sps:$4 sm:$0xff]   ;;  %v1353_v43 = vld [vmem:[#allocation8 + $0x28] ss:$20 sps:$4 sm:$0xff]  }
  0x58   :  { %v1352_v41 = vld [vmem:[#allocation8 + $0xc] ss:$20 sps:$4 sm:$0xff]   ;;  %956 = vmatprep.subr.bf16.mxu0 %v1349_v40  ;;  %v1361_v44 = vld [vmem:[#allocation8 + $0x54] ss:$20 sps:$4 sm:$0xff]   ;;  %v1359_v45 = vld [vmem:[#allocation8 + $0x50] ss:$20 sps:$4 sm:$0xff]  }
  0x59   :  { %v1355_v42 = vld [vmem:[#allocation8 + $0x2c] ss:$20 sps:$4 sm:$0xff]   ;;  %957 = vmatpush1.bf16.msra.mxu0 %v1347_v39  ;;  %v1367_v46 = vld [vmem:[#allocation8 + $0x7c] ss:$20 sps:$4 sm:$0xff]   ;;  %v1373_v48 = vld [vmem:[#allocation8 + $0xa4] ss:$20 sps:$4 sm:$0xff]  }
  0x5a   :  { %379 = vmatpush1.bf16.msra.mxu1 %v1310_v14  ;;  %958 = vmatprep.subr.bf16.mxu0 %v1355_v42  ;;  %v1365_v47 = vld [vmem:[#allocation8 + $0x78] ss:$20 sps:$4 sm:$0xff]   ;;  %v1371_v49 = vld [vmem:[#allocation8 + $0xa0] ss:$20 sps:$4 sm:$0xff]   ;;  %v1377_v51 = vld [vmem:[#allocation8 + $0xc8] ss:$20 sps:$4 sm:$0xff]  }
  0x5b   :  { %380 = vmatprep.subr.bf16.mxu1 %v1311_v15  ;;  %v1379_v50 = vld [vmem:[#allocation8 + $0xcc] ss:$20 sps:$4 sm:$0xff]   ;;  %v1385_v52 = vld [vmem:[#allocation8 + $0xf4] ss:$20 sps:$4 sm:$0xff]   ;;  %v1383_v53 = vld [vmem:[#allocation8 + $0xf0] ss:$20 sps:$4 sm:$0xff]  }
  0x5c   :  { %v1391_v54 = vld [vmem:[#allocation8 + $0x11c] ss:$20 sps:$4 sm:$0xff]   ;;  %v1389_v55 = vld [vmem:[#allocation8 + $0x118] ss:$20 sps:$4 sm:$0xff]   ;;  %v1395_v57 = vld [vmem:[#allocation8 + $0x140] ss:$20 sps:$4 sm:$0xff]  }
  0x5d   :  { %959 = vmatpush1.bf16.msra.mxu0 %v1353_v43  ;;  %v1397_v56 = vld [vmem:[#allocation8 + $0x144] ss:$20 sps:$4 sm:$0xff]   ;;  %v1403_v58 = vld [vmem:[#allocation8 + $0x16c] ss:$20 sps:$4 sm:$0xff]   ;;  %v1401_v59 = vld [vmem:[#allocation8 + $0x168] ss:$20 sps:$4 sm:$0xff]  }
  0x5e   :  { %381 = vmatpush1.bf16.msra.mxu1 %v1313_v16  ;;  %960 = vmatprep.subr.bf16.mxu0 %v1361_v44  ;;  %v1409_v60 = vld [vmem:[#allocation8 + $0x194] ss:$20 sps:$4 sm:$0xff]   ;;  %v1407_v61 = vld [vmem:[#allocation8 + $0x190] ss:$20 sps:$4 sm:$0xff]   ;;  %v1413_v63 = vld [vmem:[#allocation8 + $0x1b8] ss:$20 sps:$4 sm:$0xff]  }
  0x5f   :  { %382 = vmatprep.subr.bf16.mxu1 %v1314_v17  ;;  %v1415_v62 = vld [vmem:[#allocation8 + $0x1bc] ss:$20 sps:$4 sm:$0xff]   ;;  %v1421_v0 = vld [vmem:[#allocation8 + $0x1e4] ss:$20 sps:$4 sm:$0xff]   ;;  %v1419_v1 = vld [vmem:[#allocation8 + $0x1e0] ss:$20 sps:$4 sm:$0xff]  }
  0x60   :  { %v1427_v2 = vld [vmem:[#allocation8 + $0x20c] ss:$20 sps:$4 sm:$0xff]   ;;  %v1425_v3 = vld [vmem:[#allocation8 + $0x208] ss:$20 sps:$4 sm:$0xff]   ;;  %v1697_v5 = vshrl.u32 %v89_v4, 7 }
  0x61   :  { %961 = vmatpush1.bf16.msra.mxu0 %v1359_v45  ;;  %v87_v7 = vld [vmem:[%s1737_s2] sm:$0x3]  ;;  %v1404_v39 = vld [vmem:[#allocation8 + $0x170] ss:$20 sps:$4 sm:$0xff]   ;;  %v1416_v43 = vld [vmem:[#allocation8 + $0x1c0] ss:$20 sps:$4 sm:$0xff]  }
  0x62   :  { %383 = vmatpush1.bf16.msra.mxu1 %v1316_v18  ;;  %962 = vmatprep.subr.bf16.mxu0 %v1367_v46  ;;  %v1700_v6 = vsub.s32 0, %v1697_v5  ;;  %v1706_v8 = vsub.s32 1, %v1697_v5  ;;  %v1412_v40 = vld [vmem:[#allocation8 + $0x19c] ss:$20 sps:$4 sm:$0xff]   ;;  %v1418_v42 = vld [vmem:[#allocation8 + $0x1c4] ss:$20 sps:$4 sm:$0xff]  }
  0x63   :  { %384 = vmatprep.subr.bf16.mxu1 %v1317_v19  ;;  %v1424_v44 = vld [vmem:[#allocation8 + $0x1ec] ss:$20 sps:$4 sm:$0xff]   ;;  %v1422_v45 = vld [vmem:[#allocation8 + $0x1e8] ss:$20 sps:$4 sm:$0xff]  }
  0x64   :  { %v92_v9 = vrot.slane %v87_v7, %v1700_v6  ;;  %v96_v10 = vrot.slane %v87_v7, %v1706_v8  ;;  %v1430_v46 = vld [vmem:[#allocation8 + $0x214] ss:$20 sps:$4 sm:$0xff]   ;;  %v1444_v7 = vld [vmem:[#allocation8 + $0x10] ss:$20 sps:$4 sm:$0xff]  }
  0x65   :  { %963 = vmatpush1.bf16.msra.mxu0 %v1365_v47  ;;  %v1428_v47 = vld [vmem:[#allocation8 + $0x210] ss:$20 sps:$4 sm:$0xff]  }
  0x66   :  { %385 = vmatpush1.bf16.msra.mxu1 %v1319_v20  ;;  %964 = vmatprep.subr.bf16.mxu0 %v1373_v48  ;;  %v1350_v20 = vld [vmem:[#allocation8 + $0x8] ss:$20 sps:$4 sm:$0xff]  }
  0x67   :  { %386 = vmatprep.subr.bf16.mxu1 %v1320_v21  ;;  %v1433_v48 = vld [vmem:[#allocation8 + $0x234] ss:$20 sps:$4 sm:$0xff]  }
  0x69   :  { %965 = vmatpush1.bf16.msra.mxu0 %v1371_v49  ;;  %v1431_v49 = vld [vmem:[#allocation8 + $0x230] ss:$20 sps:$4 sm:$0xff]  }
  0x6a   :  { %387 = vmatpush1.bf16.msra.mxu1 %v1322_v22  ;;  %966 = vmatprep.subr.bf16.mxu0 %v1379_v50  ;;  %v1358_v22 = vld [vmem:[#allocation8 + $0x34] ss:$20 sps:$4 sm:$0xff]   ;;  %v1436_v50 = vld [vmem:[#allocation8 + $0x23c] ss:$20 sps:$4 sm:$0xff]  }
  0x6b   :  { %388 = vmatprep.subr.bf16.mxu1 %v1323_v23  ;;  %v1356_v23 = vld [vmem:[#allocation8 + $0x30] ss:$20 sps:$4 sm:$0xff]  }
  0x6d   :  { %967 = vmatpush1.bf16.msra.mxu0 %v1377_v51  ;;  %v1434_v51 = vld [vmem:[#allocation8 + $0x238] ss:$20 sps:$4 sm:$0xff]  }
  0x6e   :  { %389 = vmatpush1.bf16.msra.mxu1 %v1325_v24  ;;  %968 = vmatprep.subr.bf16.mxu0 %v1385_v52  ;;  %v1364_v24 = vld [vmem:[#allocation8 + $0x5c] ss:$20 sps:$4 sm:$0xff]  }
  0x6f   :  { %390 = vmatprep.subr.bf16.mxu1 %v1326_v25  ;;  %v1362_v25 = vld [vmem:[#allocation8 + $0x58] ss:$20 sps:$4 sm:$0xff]   ;;  %v1439_v52 = vld [vmem:[#allocation8 + $0x25c] ss:$20 sps:$4 sm:$0xff]  }
  0x71   :  { %969 = vmatpush1.bf16.msra.mxu0 %v1383_v53  ;;  %v1437_v53 = vld [vmem:[#allocation8 + $0x258] ss:$20 sps:$4 sm:$0xff]  }
  0x72   :  { %391 = vmatpush1.bf16.msra.mxu1 %v1328_v26  ;;  %970 = vmatprep.subr.bf16.mxu0 %v1391_v54  ;;  %v1370_v26 = vld [vmem:[#allocation8 + $0x84] ss:$20 sps:$4 sm:$0xff]  }
  0x73   :  { %392 = vmatprep.subr.bf16.mxu1 %v1329_v27  ;;  %v1368_v27 = vld [vmem:[#allocation8 + $0x80] ss:$20 sps:$4 sm:$0xff]   ;;  %v1442_v54 = vld [vmem:[#allocation8 + $0x264] ss:$20 sps:$4 sm:$0xff]  }
  0x75   :  { %971 = vmatpush1.bf16.msra.mxu0 %v1389_v55  ;;  %v1440_v55 = vld [vmem:[#allocation8 + $0x260] ss:$20 sps:$4 sm:$0xff]  }
  0x76   :  { %393 = vmatpush1.bf16.msra.mxu1 %v1331_v28  ;;  %972 = vmatprep.subr.bf16.mxu0 %v1397_v56  ;;  %v1376_v28 = vld [vmem:[#allocation8 + $0xac] ss:$20 sps:$4 sm:$0xff]   ;;  %v1443_v56 = vld [vmem:[#allocation8 + $0x150] ss:$20 sps:$4 sm:$0xff]  }
  0x77   :  { %394 = vmatprep.subr.bf16.mxu1 %v1332_v29  ;;  %v1374_v29 = vld [vmem:[#allocation8 + $0xa8] ss:$20 sps:$4 sm:$0xff]  }
  0x79   :  { %973 = vmatpush1.bf16.msra.mxu0 %v1395_v57  ;;  %v200_v57 = vld [vmem:[%s1739_s4] sm:$0x3] }
  0x7a   :  { %395 = vmatpush1.bf16.msra.mxu1 %v1334_v30  ;;  %974 = vmatprep.subr.bf16.mxu0 %v1403_v58  ;;  %v1382_v30 = vld [vmem:[#allocation8 + $0xd4] ss:$20 sps:$4 sm:$0xff]   ;;  %v205_v58 = vrot.slane %v200_v57, %v1700_v6 }
  0x7b   :  { %396 = vmatprep.subr.bf16.mxu1 %v1335_v31  ;;  %v1380_v31 = vld [vmem:[#allocation8 + $0xd0] ss:$20 sps:$4 sm:$0xff]  }
  0x7d   :  { %975 = vmatpush1.bf16.msra.mxu0 %v1401_v59  ;;  %v209_v59 = vrot.slane %v200_v57, %v1706_v8 }
  0x7e   :  { %397 = vmatpush1.bf16.msra.mxu1 %v1337_v32  ;;  %976 = vmatprep.subr.bf16.mxu0 %v1409_v60  ;;  %v1388_v32 = vld [vmem:[#allocation8 + $0xfc] ss:$20 sps:$4 sm:$0xff]  }
  0x7f   :  { %398 = vmatprep.subr.bf16.mxu1 %v1338_v33  ;;  %v1386_v33 = vld [vmem:[#allocation8 + $0xf8] ss:$20 sps:$4 sm:$0xff]  }
  0x81   :  { %977 = vmatpush1.bf16.msra.mxu0 %v1407_v61 }
  0x82   :  { %399 = vmatpush1.bf16.msra.mxu1 %v1340_v34  ;;  %978 = vmatprep.subr.bf16.mxu0 %v1415_v62  ;;  %v1394_v34 = vld [vmem:[#allocation8 + $0x124] ss:$20 sps:$4 sm:$0xff]  }
  0x83   :  { %400 = vmatprep.subr.bf16.mxu1 %v1341_v35  ;;  %v1392_v35 = vld [vmem:[#allocation8 + $0x120] ss:$20 sps:$4 sm:$0xff]  }
  0x85   :  { %979 = vmatpush1.bf16.msra.mxu0 %v1413_v63 }
  0x86   :  { %401 = vmatpush1.bf16.msra.mxu1 %v1343_v36  ;;  %980 = vmatprep.subr.bf16.mxu0 %v1421_v0  ;;  %v1400_v36 = vld [vmem:[#allocation8 + $0x14c] ss:$20 sps:$4 sm:$0xff]  }
  0x87   :  { %402 = vmatprep.subr.bf16.mxu1 %v1344_v37  ;;  %v1398_v37 = vld [vmem:[#allocation8 + $0x148] ss:$20 sps:$4 sm:$0xff]  }
  0x89   :  { %981 = vmatpush1.bf16.msra.mxu0 %v1419_v1 }
  0x8a   :  { %403 = vmatpush1.bf16.msra.mxu1 %v1346_v38  ;;  %982 = vmatprep.subr.bf16.mxu0 %v1427_v2  ;;  %v1406_v38 = vld [vmem:[#allocation8 + $0x174] ss:$20 sps:$4 sm:$0xff]  }
  0x8b   :  { %997 = vmatprep.subr.bf16.mxu1 %v1352_v41  ;;  %v1410_v41 = vld [vmem:[#allocation8 + $0x198] ss:$20 sps:$4 sm:$0xff]  }
  0x8d   :  { %983 = vmatpush1.bf16.msra.mxu0 %v1425_v3 }
  0x8e   :  { %984 = vmatprep.subr.bf16.mxu0 %v1433_v48 }
  0x91   :  { %985 = vmatpush1.bf16.msra.mxu0 %v1431_v49 }
  0x92   :  { %986 = vmatprep.subr.bf16.mxu0 %v1439_v52 }
  0x95   :  { %987 = vmatpush1.bf16.msra.mxu0 %v1437_v53 }
  0x96   :  { %1261 = vmatprep.subr.bf16.mxu0 %v1443_v56 }
 0x126   :  { %v157_v11 = vpop.f32.mrb[0].mxu0 }
 0x127   :  { %v158_v12 = vadd.f32 %v157_v11, %v92_v9  ;;  %v159_v13 = vpop.f32.mrb[1].mxu0  ;;  %v1446_v11 = vld [vmem:[#allocation8 + $0x38] ss:$20 sps:$4 sm:$0xff]  }
 0x128   :  { %v160_v14 = vadd.f32 %v159_v13, %v96_v10  ;;  %v161_v15 = vpop.f32.mrb[2].mxu0  ;;  %v1445_v10 = vld [vmem:[#allocation8 + $0x178] ss:$20 sps:$4 sm:$0xff]   ;;  %v1448_v13 = vld [vmem:[#allocation8 + $0x60] ss:$20 sps:$4 sm:$0xff]  }
 0x129   :  { %v164_v16 = vmax.f32 %v158_v12, 0.0  ;;  %v162_v17 = vpop.f32.mrb[3].mxu0  ;;  %v1447_v12 = vld [vmem:[#allocation8 + $0x1a0] ss:$20 sps:$4 sm:$0xff]   ;;  %v1450_v15 = vld [vmem:[#allocation8 + $0x88] ss:$20 sps:$4 sm:$0xff]  }
 0x12a   :  { %v165_v18 = vmax.f32 %v160_v14, 0.0  ;;  %v1449_v14 = vld [vmem:[#allocation8 + $0x1c8] ss:$20 sps:$4 sm:$0xff]   ;;  %v1452_v17 = vld [vmem:[#allocation8 + $0xb0] ss:$20 sps:$4 sm:$0xff]  }
 0x12b   :  { %v166_v21 = vpack.c.bf16 %v164_v16, %v164_v16  ;;  %v1451_v16 = vld [vmem:[#allocation8 + $0x1f0] ss:$20 sps:$4 sm:$0xff]  }
 0x12c   :  { %v167_v19 = vpack.c.bf16 %v165_v18, %v165_v18  ;;  %v1453_v18 = vld [vmem:[#allocation8 + $0x218] ss:$20 sps:$4 sm:$0xff]  }
 0x12e   :  { %404 = vmatprep.mubr.bf16.mxu1 %v167_v19  ;;  %v1454_v19 = vld [vmem:[#allocation8 + $0xd8] ss:$20 sps:$4 sm:$0xff]  }
 0x12f   :  { %405 = vmatmul.mubr.bf16.vlgmr.msra.gmra.mrb[0].mxu1 %v166_v21  ;;  %v1456_v21 = vld [vmem:[#allocation8 + $0x100] ss:$20 sps:$4 sm:$0xff]  }
 0x130   :  { %998 = vmatpush1.bf16.msra.mxu1 %v1350_v20  ;;  %v1455_v20 = vld [vmem:[#allocation8 + $0x240] ss:$20 sps:$4 sm:$0xff]  }
 0x131   :  { %999 = vmatprep.subr.bf16.mxu1 %v1358_v22  ;;  %v1457_v22 = vld [vmem:[#allocation8 + $0x268] ss:$20 sps:$4 sm:$0xff]  }
 0x134   :  { %1000 = vmatpush1.bf16.msra.mxu1 %v1356_v23  ;;  %v1458_v23 = vld [vmem:[#allocation8 + $0x128] ss:$20 sps:$4 sm:$0xff]  }
 0x135   :  { %1001 = vmatprep.subr.bf16.mxu1 %v1364_v24  ;;  %v525_v24 = vsub.s32 2, %v1697_v5 }
 0x138   :  { %1002 = vmatpush1.bf16.msra.mxu1 %v1362_v25  ;;  %v513_v25 = vld [vmem:[%s1741_s6] sm:$0x1f]  ;;  %s1602_s6 = smov [#allocation10]  }
 0x139   :  { %1003 = vmatprep.subr.bf16.mxu1 %v1370_v26  ;;  %v529_v26 = vsub.s32 3, %v1697_v5  ;;  %v518_v49 = vrot.slane %v513_v25, %v1700_v6  ;;  %s1133_s29 = sshll.u32 %s1602_s6, 4  ;;  %s1134_s29 = int_to_ptr.vmem [resolvable:$true] %s1133_s29 }
 0x13a   :  { %s1563_s30 = scalar_lea.vmem %s1134_s29, 512  ;;  %p1568_p5 = scmp.lt.s32.totalorder %s1134_s29, %s1134_s29 }
 0x13b   :  { %p1564_p4 = scmp.ne.s32.totalorder %s1134_s29, %s1563_s30  ;;  %p1569_p6 = scmp.lt.s32.totalorder %s1563_s30, %s1563_s30 }
 0x13c   :  { %1004 = vmatpush1.bf16.msra.mxu1 %v1368_v27  ;;  %v526_v27 = vrot.slane %v513_v25, %v525_v24 }
 0x13d   :  { %1005 = vmatprep.subr.bf16.mxu1 %v1376_v28  ;;  %v522_v28 = vrot.slane %v513_v25, %v1706_v8  ;;  %p1570_p7 = por %p1569_p6, %p1568_p5 }
 0x13f   :  { %p1571_p8 = pnand %p1570_p7, %p1564_p4 }
 0x140   :  { %1006 = vmatpush1.bf16.msra.mxu1 %v1374_v29 }
 0x141   :  { %1007 = vmatprep.subr.bf16.mxu1 %v1382_v30 }
 0x144   :  { %1008 = vmatpush1.bf16.msra.mxu1 %v1380_v31  ;;  %v530_v31 = vrot.slane %v513_v25, %v529_v26 }
 0x145   :  { %1009 = vmatprep.subr.bf16.mxu1 %v1388_v32 }
 0x148   :  { %1010 = vmatpush1.bf16.msra.mxu1 %v1386_v33 }
 0x149   :  { %1011 = vmatprep.subr.bf16.mxu1 %v1394_v34 }
 0x14c   :  { %1012 = vmatpush1.bf16.msra.mxu1 %v1392_v35 }
 0x14d   :  { %1013 = vmatprep.subr.bf16.mxu1 %v1400_v36 }
 0x150   :  { %1014 = vmatpush1.bf16.msra.mxu1 %v1398_v37 }
 0x151   :  { %1015 = vmatprep.subr.bf16.mxu1 %v1406_v38 }
 0x154   :  { %1016 = vmatpush1.bf16.msra.mxu1 %v1404_v39 }
 0x155   :  { %1017 = vmatprep.subr.bf16.mxu1 %v1412_v40 }
 0x158   :  { %1018 = vmatpush1.bf16.msra.mxu1 %v1410_v41 }
 0x159   :  { %1019 = vmatprep.subr.bf16.mxu1 %v1418_v42 }
 0x15c   :  { %1020 = vmatpush1.bf16.msra.mxu1 %v1416_v43  ;;  %v533_v43 = vsub.s32 4, %v1697_v5 }
 0x15d   :  { %1021 = vmatprep.subr.bf16.mxu1 %v1424_v44 }
 0x160   :  { %1022 = vmatpush1.bf16.msra.mxu1 %v1422_v45  ;;  %v534_v45 = vrot.slane %v513_v25, %v533_v43 }
 0x161   :  { %1023 = vmatprep.subr.bf16.mxu1 %v1430_v46 }
 0x164   :  { %1024 = vmatpush1.bf16.msra.mxu1 %v1428_v47 }
 0x165   :  { %1025 = vmatprep.subr.bf16.mxu1 %v1436_v50 }
 0x168   :  { %1026 = vmatpush1.bf16.msra.mxu1 %v1434_v51 }
 0x169   :  { %1027 = vmatprep.subr.bf16.mxu1 %v1442_v54 }
 0x16c   :  { %1028 = vmatpush1.bf16.msra.mxu1 %v1440_v55 }
 0x202   :  { %v406_v60 = vpop.f32.mrb[0].mxu1 }
 0x203   :  { %v407_v61 = vadd.f32 %v406_v60, %v205_v58  ;;  %v408_v62 = vpop.f32.mrb[1].mxu1 }
 0x204   :  { %v409_v63 = vadd.f32 %v408_v62, %v209_v59  ;;  %v410_v0 = vpop.f32.mrb[2].mxu1 }
 0x205   :  { %v413_v1 = vmax.f32 %v407_v61, 0.0  ;;  %v411_v2 = vpop.f32.mrb[3].mxu1 }
 0x206   :  { %v414_v3 = vmax.f32 %v409_v63, 0.0 }
 0x207   :  { %v415_v9 = vpack.c.bf16 %v413_v1, %v413_v1 }
 0x208   :  { %v416_v4 = vpack.c.bf16 %v414_v3, %v414_v3 }
 0x20a   :  { %988 = vmatprep.mubr.bf16.mxu0 %v416_v4  ;;  %1029 = vmatprep.mubr.bf16.mxu1 %v416_v4 }
 0x20b   :  { %989 = vmatmul.mubr.bf16.vlgmr.msra.gmra.mrb[4].mxu0 %v415_v9  ;;  %1030 = vmatmul.mubr.bf16.vlgmr.msra.gmra.mrb[4].mxu1 %v415_v9 }
 0x20c   :  { %1262 = vmatpush3.bf16.msra.mxu0 %v1444_v7  ;;  %1070 = vmatprep.mubr.bf16.mxu0 %v416_v4 }
 0x20d   :  { %1263 = vmatprep.subr.bf16.mxu0 %v1445_v10 }
 0x210   :  { %1264 = vmatpush3.bf16.msra.mxu0 %v1446_v11 }
 0x211   :  { %1265 = vmatprep.subr.bf16.mxu0 %v1447_v12 }
 0x214   :  { %1266 = vmatpush3.bf16.msra.mxu0 %v1448_v13 }
 0x215   :  { %1267 = vmatprep.subr.bf16.mxu0 %v1449_v14 }
 0x218   :  { %1268 = vmatpush3.bf16.msra.mxu0 %v1450_v15 }
 0x219   :  { %1269 = vmatprep.subr.bf16.mxu0 %v1451_v16 }
 0x21c   :  { %1270 = vmatpush3.bf16.msra.mxu0 %v1452_v17 }
 0x21d   :  { %1271 = vmatprep.subr.bf16.mxu0 %v1453_v18 }
 0x220   :  { %1272 = vmatpush3.bf16.msra.mxu0 %v1454_v19 }
 0x221   :  { %1273 = vmatprep.subr.bf16.mxu0 %v1455_v20 }
 0x224   :  { %1274 = vmatpush3.bf16.msra.mxu0 %v1456_v21 }
 0x225   :  { %1275 = vmatprep.subr.bf16.mxu0 %v1457_v22 }
 0x228   :  { %1276 = vmatpush3.bf16.msra.mxu0 %v1458_v23 }
 0x22b   :  { %1071 = vmatmul.mubr.bf16.vlgmr.msra.gmra.mrb[8].mxu0 %v415_v9 }
 0x2de   :  { %v990_v29 = vpop.f32.mrb[4].mxu0  ;;  %v1031_v30 = vpop.f32.mrb[4].mxu1 }
 0x2df   :  { %v1032_v32 = vadd.f32 %v1031_v30, %v526_v27  ;;  %v992_v33 = vpop.f32.mrb[5].mxu0  ;;  %v1033_v34 = vpop.f32.mrb[5].mxu1  ;;  %v991_v52 = vadd.f32 %v990_v29, %v518_v49 }
 0x2e0   :  { %v993_v35 = vadd.f32 %v992_v33, %v522_v28  ;;  %v994_v36 = vpop.f32.mrb[6].mxu0  ;;  %v1035_v37 = vpop.f32.mrb[6].mxu1  ;;  %v1034_v41 = vadd.f32 %v1033_v34, %v530_v31 }
 0x2e1   :  { %v995_v38 = vpop.f32.mrb[7].mxu0  ;;  %v1036_v39 = vpop.f32.mrb[7].mxu1 }
 0x2e2   :  { %v1078_v40 = vadd.f32 %v1032_v32, %v993_v35 }
 0x2e4   :  { %v1079_v42 = vadd.f32 %v1078_v40, %v1034_v41 }
 0x2fe   :  { %v1277_v44 = vpop.f32.mrb[8].mxu0 }
 0x2ff   :  { %v1278_v46 = vpop.f32.mrb[9].mxu0 }
 0x300   :  { %v1279_v8 = vadd.f32 %v1278_v46, %v1277_v44  ;;  %v1280_v47 = vpop.f32.mrb[10].mxu0 }
 0x301   :  { %v1281_v48 = vpop.f32.mrb[11].mxu0 }
 0x302   :  { %v1073_v50 = vadd.f32 %v1279_v8, %v534_v45 }
 0x304   :  { %v1080_v51 = vadd.f32 %v1079_v42, %v1073_v50 }
 0x306   :  { %v1081_v53 = vmul.f32 0.25, %v1080_v51 }
 0x308   :  { %v1082_v54 = vsub.f32 %v991_v52, %v1081_v53 }
 0x30a   :  { %v1105_v55 = vadd.f32 %v1082_v54, %v1034_v41  ;;  %v1083_v56 = vadd.f32 %v1082_v54, %v993_v35  ;;  %v1116_v57 = vadd.f32 %v1082_v54, %v1073_v50  ;;  %v1094_v58 = vadd.f32 %v1082_v54, %v1032_v32 }
 0x30c   :  { %1106 = vmax.xlane.f32.xlu1 %v1105_v55  ;;  %1084 = vmax.xlane.f32.xlu0 %v1083_v56 }
 0x310   :  { %1117 = vmax.xlane.f32.xlu1 %v1116_v57  ;;  %1095 = vmax.xlane.f32.xlu0 %v1094_v58 }
 0x399   :  { %v1107_v5 = vpop.xlane.xlu1 %1106  ;;  %v1085_v59 = vpop.xlane.xlu0 %1084 }
 0x39a   :  { %v1108_v60 = vsub.f32 %v1105_v55, %v1107_v5  ;;  %v1086_v61 = vsub.f32 %v1083_v56, %v1085_v59 }
 0x39c   :  { %v1087_v62 = vmul.f32 1.442695, %v1086_v61  ;;  %v1109_v0 = vmul.f32 1.442695, %v1108_v60 }
 0x39d   :  { %v1118_v63 = vpop.xlane.xlu1 %1117  ;;  %v1096_v6 = vpop.xlane.xlu0 %1095 }
 0x39e   :  { %v1097_v1 = vsub.f32 %v1094_v58, %v1096_v6  ;;  %1459 = vpow2.f32 %v1087_v62  ;;  %v1119_v2 = vsub.f32 %v1116_v57, %v1118_v63 }
 0x39f   :  { %1461 = vpow2.f32 %v1109_v0 }
 0x3a0   :  { %v1098_v3 = vmul.f32 1.442695, %v1097_v1  ;;  %v1120_v4 = vmul.f32 1.442695, %v1119_v2 }
 0x3a2   :  { %1463 = vpow2.f32 %v1098_v3 }
 0x3a3   :  { %1465 = vpow2.f32 %v1120_v4 }
 0x3a8   :  { %v1460_v7 = vpop.eup %1459 }
 0x3a9   :  { %1089 = vadd.xlane.f32.xlu0 %v1460_v7  ;;  %v1462_v9 = vpop.eup %1461 }
 0x3ac   :  { %v1464_v10 = vpop.eup %1463 }
 0x3ad   :  { %1111 = vadd.xlane.f32.xlu0 %v1462_v9  ;;  %1100 = vadd.xlane.f32.xlu1 %v1464_v10  ;;  %v1466_v11 = vpop.eup %1465 }
 0x3b1   :  { %1122 = vadd.xlane.f32.xlu1 %v1466_v11 }
 0x436   :  { %v1090_v12 = vpop.xlane.xlu0 %1089 }
 0x437   :  { %1467 = vrcp.f32 %v1090_v12 }
 0x43a   :  { %v1101_v13 = vpop.xlane.xlu1 %1100  ;;  %v1112_v14 = vpop.xlane.xlu0 %1111 }
 0x43b   :  { %1469 = vrcp.f32 %v1101_v13 }
 0x43c   :  { %1471 = vrcp.f32 %v1112_v14 }
 0x43e   :  { %v1123_v15 = vpop.xlane.xlu1 %1122 }
 0x43f   :  { %1473 = vrcp.f32 %v1123_v15 }
 0x441   :  { %v1468_v16 = vpop.eup %1467 }
 0x442   :  { %v1092_v17 = vmul.f32 %v1468_v16, %v1460_v7 }
 0x444   :  { %1093 = vst [vmem:[#allocation10] sm:$0xff] %v1092_v17 }
 0x445   :  { %v1470_v18 = vpop.eup %1469 }
 0x446   :  { %v1472_v19 = vpop.eup %1471  ;;  %v1103_v20 = vmul.f32 %v1470_v18, %v1464_v10 }
 0x447   :  { %v1114_v21 = vmul.f32 %v1472_v19, %v1462_v9 }
 0x448   :  { %1104 = vst [vmem:[#allocation10 + $0x8] sm:$0xff] %v1103_v20 }
 0x449   :  { %v1474_v22 = vpop.eup %1473  ;;  %1115 = vst [vmem:[#allocation10 + $0x10] sm:$0xff] %v1114_v21 }
 0x44a   :  { %v1125_v23 = vmul.f32 %v1474_v22, %v1466_v11 }
 0x44c   :  { %1126 = vst [vmem:[#allocation10 + $0x18] sm:$0xff] %v1125_v23 }
 0x44d   :  { %1574 = shalt.err (!%p1571_p8)
}
 0x44e   :  { %s1575_s10 = scalar_lea.hbm %s1742_s7, 512 }
 0x44f   :  { %p1576_p9 = scmp.ne.s32.totalorder %s1742_s7, %s1575_s10  ;;  %p1579_p10 = scmp.lt.u32.totalorder %s1575_s10, %s1742_s7 }
 0x451   :  { %p1581_p11 = pnand %p1579_p10, %p1576_p9 }
 0x453   :  { %1584 = shalt.err (!%p1581_p11)
}
 0x454   :  { %1136 = dma.vmem_to_hbm [thread:$0]  %s1134_s29, 512, %s1742_s7, [#allocation4]  }
 0x455   :  { %1591 = dma.done.wait [#allocation4], 512  }
 0x456   :  { %1592 = vsyncadd [#allocation4], 4294966784 }
 0x457   :  { %1140 = vsyncpa [#allocation3], 1 }
 0x458   :  { %1141 = vsyncpa [#allocation6], 1 }
 0x459   :  { %1142 = vsyncpa [#allocation9], 1 }
 0x45a   :  { %1143 = vsyncpa [#allocation4], 1 }

</bundles_post_ra>
